<compile_context>
chip_gen: v5e
topology: v5e:2x2
jax: 0.10.0
libtpu: 0.0.40
codegen_flags: <defaults>
</compile_context>

<pallas_src>
import functools

import jax
import jax.numpy as jnp
import numpy as np
from jax import lax
from jax.experimental import pallas as pl
from jax.experimental.pallas import tpu as pltpu


# ----------------------------------------------------------------------------
# shared in-kernel helpers
# ----------------------------------------------------------------------------
def _time_sum(x, limit, t_offset, masked):
    """x: (TB, C, TL) native dtype; limit: (TB, 1, 1) int32 -> (TB, C) f32 sums."""
    if not masked:
        return jnp.sum(x, axis=-1, dtype=jnp.float32)
    tl = x.shape[-1]
    pos = jax.lax.broadcasted_iota(jnp.int32, (1, 1, tl), 2) + t_offset
    mask = pos < limit                                   # (TB, 1, TL)
    xm = jnp.where(mask, x, jnp.zeros((), x.dtype))      # stay in native dtype
    return jnp.sum(xm, axis=-1, dtype=jnp.float32)       # f32 accumulation


def _gate_from_sum(acc, inv, w1t_ref, b1_ref, w2t_ref, b2_ref):
    """acc: (TB, C) f32 masked sums; inv: (TB, 1) f32 = 1/count -> (TB, C) gate."""
    s = (acc * inv).astype(w1t_ref.dtype)                # masked mean (bf16-able)
    h = jnp.dot(s, w1t_ref[...], preferred_element_type=jnp.float32) + b1_ref[...]
    h = jnp.maximum(h, 0.0).astype(w2t_ref.dtype)        # ReLU
    g = jnp.dot(h, w2t_ref[...], preferred_element_type=jnp.float32) + b2_ref[...]
    return jax.nn.sigmoid(g)                             # (TB, C) f32


# ----------------------------------------------------------------------------
# kernels
# ----------------------------------------------------------------------------
def _se_fused_kernel(limit_ref, inv_ref, x_ref, w1t_ref, b1_ref, w2t_ref, b2_ref,
                     o_ref, *, masked, chunk):
    # One batch tile, full time axis; stream time in lane-dense chunks so the
    # live working set stays bounded even for multi-MiB tiles.
    tb, c, l = x_ref.shape
    n_chunks = l // chunk
    limit = limit_ref[...] if masked else None           # (tb, 1, 1) int32
    inv = inv_ref[...][:, :, 0]                          # (tb, 1) f32

    if n_chunks == 1:
        x = x_ref[...]                                    # single read, reused
        acc = _time_sum(x, limit, 0, masked)
        g = _gate_from_sum(acc, inv, w1t_ref, b1_ref, w2t_ref, b2_ref)
        o_ref[...] = g.astype(o_ref.dtype)[:, :, None] * x
        return

    def rbody(i, acc):
        start = pl.multiple_of(i * chunk, chunk)
        xc = x_ref[:, :, pl.ds(start, chunk)]
        return acc + _time_sum(xc, limit, start, masked)

    acc0 = jnp.zeros((tb, c), jnp.float32)
    if n_chunks <= 8:
        acc = lax.fori_loop(0, n_chunks, rbody, acc0, unroll=True)
    else:
        acc = lax.fori_loop(0, n_chunks, rbody, acc0)

    g = _gate_from_sum(acc, inv, w1t_ref, b1_ref, w2t_ref, b2_ref)
    gq = g.astype(o_ref.dtype)[:, :, None]                # (tb, C, 1)

    def sbody(i, carry):
        start = pl.multiple_of(i * chunk, chunk)
        o_ref[:, :, pl.ds(start, chunk)] = gq * x_ref[:, :, pl.ds(start, chunk)]
        return carry

    if n_chunks <= 8:
        lax.fori_loop(0, n_chunks, sbody, 0, unroll=True)
    else:
        lax.fori_loop(0, n_chunks, sbody, 0)


def _se_reduce_gate_kernel(limit_ref, inv_ref, x_ref, w1t_ref, b1_ref, w2t_ref,
                           b2_ref, g_ref, acc_ref, *, masked):
    t = pl.program_id(1)

    @pl.when(t == 0)
    def _():
        acc_ref[...] = jnp.zeros_like(acc_ref)

    tl = x_ref.shape[-1]
    off = t * tl                                          # int32 element offset
    acc_ref[...] += _time_sum(x_ref[...], limit_ref[...], off, masked)

    @pl.when(t == pl.num_programs(1) - 1)
    def _():
        g = _gate_from_sum(acc_ref[...], inv_ref[...][:, :, 0],
                           w1t_ref, b1_ref, w2t_ref, b2_ref)
        g_ref[...] = g[:, :, None]                        # (tb, C, 1) gates


def _se_scale_kernel(g_ref, x_ref, o_ref):
    # (tb, C, 1) gate broadcast over (tb, C, TL): pure lane splat, no relayout.
    o_ref[...] = g_ref[...].astype(o_ref.dtype) * x_ref[...]


# ----------------------------------------------------------------------------
# planning helpers (generation-aware tiling)
# ----------------------------------------------------------------------------
def _tpu_vmem_limit_bytes():
    """Scoped VMEM limit derived from the physical VMEM of this generation."""
    try:
        phys = int(pltpu.get_tpu_info().vmem_capacity_bytes)
    except Exception:  # not on TPU / API drift: conservative (v7x-sized) fallback
        phys = 64 * 1024 * 1024
    return min(phys * 3 // 4, 100 * 1024 * 1024)


def _plan_time_tile(L, C, itemsize, budget):
    """Return (tl, L_pad). tl == L_pad means the fused single-time-block path."""
    if C * L * itemsize <= budget:
        return L, L                                       # full time extent fits
    tl = 128                                              # lane-dense tiling
    while C * (tl * 2) * itemsize <= budget:
        tl *= 2
    if L % 128 == 0:                                      # prefer no padding
        t = tl
        while t > 128 and L % t != 0:
            t //= 2
        if L % t == 0:
            return t, L
    l_pad = -(-L // tl) * tl
    return tl, l_pad


def _pick_batch_tile(B, per_batch_bytes, budget, ensure_two_steps):
    """Largest divisor of B under the budget; TB may go down to 1.  Optionally
    capped so the batch (parallel) grid axis has >=2 steps (v7x megacore)."""
    divisors = [d for d in range(1, B + 1) if B % d == 0]
    tb = 1
    for d in divisors:
        if d * per_batch_bytes <= budget:
            tb = d
    if ensure_two_steps and B >= 2 and tb == B:
        tb = max(d for d in divisors if d <= B // 2)
    return tb


def _pick_chunk(L):
    """Lane-dense in-kernel streaming chunk for the fused path."""
    if L <= 1024:
        return L
    for c in (1024, 512, 256, 128):
        if L % c == 0:
            return c
    return L


# ----------------------------------------------------------------------------
# wrapper
# ----------------------------------------------------------------------------
def se_block(x, w1, b1, w2, b2, lengths=None, *, time_tile=None,
             tile_budget_bytes=None):
    """x: (B, C, L). w1: (S, C), b1: (S,), w2: (C, S), b2: (C,).
    lengths: optional (B,) floats in (0, 1] (fraction of valid frames)."""
    B, C, L = x.shape
    S, C_in = w1.shape
    C_out = w2.shape[0]
    assert C_in == C, "conv1 expects in_channels == C"
    assert C_out == C, "SEBlock rescales its input: out_channels must equal in_channels"

    itemsize = jnp.dtype(x.dtype).itemsize
    wdtype = jnp.bfloat16 if x.dtype == jnp.bfloat16 else jnp.float32

    # 1x1 convs == dense on the channel axis; pre-transposed so the in-kernel
    # matmuls are batched over the batch tile: (TB,C)@(C,S), (TB,S)@(S,C).
    w1t = jnp.asarray(w1).astype(wdtype).T                # (C, S)
    w2t = jnp.asarray(w2).astype(wdtype).T                # (S, C)
    b1r = jnp.asarray(b1, jnp.float32).reshape(1, S)
    b2r = jnp.asarray(b2, jnp.float32).reshape(1, C)
    weight_bytes = ((w1t.size + w2t.size) * jnp.dtype(wdtype).itemsize
                    + (b1r.size + b2r.size) * 4) * 2       # double-buffered

    vmem_limit = _tpu_vmem_limit_bytes()
    if tile_budget_bytes is None:
        # double-buffered input + output x blocks must fit under the limit
        tile_budget_bytes = max((vmem_limit - weight_bytes) // 4, 1 << 20)

    if time_tile is None:
        tl, L_pad = _plan_time_tile(L, C, itemsize, tile_budget_bytes)
    else:
        tl = int(time_tile)
        assert tl == L or tl % 128 == 0, "time_tile must be lane-dense (128k) or == L"
        L_pad = -(-L // tl) * tl

    # Masking: frame i valid iff i < lengths*L  <=>  i < ceil(lengths*L) (int32,
    # exact for any L); 1/count precomputed (guarded against length == 0).
    if lengths is None:
        limit = jnp.full((B, 1, 1), L, jnp.int32)
        inv = jnp.full((B, 1, 1), 1.0 / float(L), jnp.float32)
        masked = False                                    # zero padding keeps sums exact
    else:
        lim_f = lengths.astype(jnp.float32).reshape(B, 1, 1) * L
        limit = jnp.ceil(lim_f).astype(jnp.int32)
        count = jnp.clip(limit.astype(jnp.float32), 1.0, float(L))
        inv = 1.0 / count
        masked = True

    x_in = x
    if L_pad != L:
        x_in = jnp.pad(x, ((0, 0), (0, 0), (0, L_pad - L)))   # lane-dense tail

    tb = _pick_batch_tile(B, C * tl * itemsize, tile_budget_bytes,
                          ensure_two_steps=True)
    nb = B // tb
    nt = L_pad // tl

    weight_specs = [
        pl.BlockSpec((C, S), lambda *_: (0, 0)),            # w1^T
        pl.BlockSpec((1, S), lambda *_: (0, 0)),            # b1
        pl.BlockSpec((S, C), lambda *_: (0, 0)),            # w2^T
        pl.BlockSpec((1, C), lambda *_: (0, 0)),            # b2
    ]
    cp_kwargs = dict(vmem_limit_bytes=int(vmem_limit))

    if nt == 1:
        # ---- single fused kernel: one HBM read of x (2x|x| traffic) ---------
        kernel = functools.partial(_se_fused_kernel, masked=masked,
                                   chunk=_pick_chunk(L_pad))
        out = pl.pallas_call(
            kernel,
            out_shape=jax.ShapeDtypeStruct((B, C, L_pad), x.dtype),
            grid_spec=pltpu.PrefetchScalarGridSpec(
                num_scalar_prefetch=0,
                grid=(nb,),
                in_specs=[
                    pl.BlockSpec((tb, 1, 1), lambda b: (b, 0, 0)),       # limit
                    pl.BlockSpec((tb, 1, 1), lambda b: (b, 0, 0)),       # 1/count
                    pl.BlockSpec((tb, C, L_pad), lambda b: (b, 0, 0)),   # x tile
                    *weight_specs,
                ],
                out_specs=pl.BlockSpec((tb, C, L_pad), lambda b: (b, 0, 0)),
            ),
            compiler_params=pltpu.CompilerParams(
                dimension_semantics=("parallel",), **cp_kwargs),
        )(limit, inv, x_in, w1t, b1r, w2t, b2r)
        return out if L_pad == L else out[:, :, :L]

    # ---- two-pass: (1) reduce + gate, (2) lane-dense broadcast scale --------
    reduce_kernel = functools.partial(_se_reduce_gate_kernel, masked=masked)
    gates = pl.pallas_call(
        reduce_kernel,
        out_shape=jax.ShapeDtypeStruct((B, C, 1), jnp.float32),
        grid_spec=pltpu.PrefetchScalarGridSpec(
            num_scalar_prefetch=0,
            grid=(nb, nt),                                   # reduction axis last
            in_specs=[
                pl.BlockSpec((tb, 1, 1), lambda b, t: (b, 0, 0)),        # limit
                pl.BlockSpec((tb, 1, 1), lambda b, t: (b, 0, 0)),        # 1/count
                pl.BlockSpec((tb, C, tl), lambda b, t: (b, 0, t)),       # x tile
                *weight_specs,
            ],
            out_specs=pl.BlockSpec((tb, C, 1), lambda b, t: (b, 0, 0)),
            scratch_shapes=[pltpu.VMEM((tb, C), jnp.float32)],
        ),
        compiler_params=pltpu.CompilerParams(
            dimension_semantics=("parallel", "arbitrary"), **cp_kwargs),
    )(limit, inv, x_in, w1t, b1r, w2t, b2r)

    out = pl.pallas_call(
        _se_scale_kernel,
        out_shape=jax.ShapeDtypeStruct((B, C, L_pad), x.dtype),
        grid_spec=pltpu.PrefetchScalarGridSpec(
            num_scalar_prefetch=0,
            grid=(nb, nt),
            in_specs=[
                pl.BlockSpec((tb, C, 1), lambda b, t: (b, 0, 0)),        # gates
                pl.BlockSpec((tb, C, tl), lambda b, t: (b, 0, t)),       # x tile
            ],
            out_specs=pl.BlockSpec((tb, C, tl), lambda b, t: (b, 0, t)),
        ),
        compiler_params=pltpu.CompilerParams(
            dimension_semantics=("parallel", "parallel"), **cp_kwargs),
    )(gates, x_in)
    return out if L_pad == L else out[:, :, :L]


# ----------------------------------------------------------------------------
# pure-JAX reference (matches the PyTorch/MLX module semantics)
# ----------------------------------------------------------------------------
def se_block_ref(x, w1, b1, w2, b2, lengths=None):
    B, C, L = x.shape
    xf = x.astype(jnp.float32)
    if lengths is not None:
        mask = (jnp.arange(L)[None, :]
                < (lengths.astype(jnp.float32) * L)[:, None]).astype(jnp.float32)
        mask = mask[:, None, :]                               # (B, 1, L)
        total = jnp.sum(mask, axis=2, keepdims=True)
        s = jnp.sum(xf * mask, axis=2, keepdims=True) / total  # (B, C, 1)
    else:
        s = jnp.mean(xf, axis=2, keepdims=True)
    s = s[..., 0]                                             # (B, C)
    w1f = jnp.asarray(w1, jnp.float32)
    w2f = jnp.asarray(w2, jnp.float32)
    h = jnp.maximum(s @ w1f.T + jnp.asarray(b1, jnp.float32)[None, :], 0.0)
    g = jax.nn.sigmoid(h @ w2f.T + jnp.asarray(b2, jnp.float32)[None, :])
    return (g[:, :, None] * xf).astype(x.dtype)


if __name__ == "__main__":
    B, C, S = 2, 16, 8

    key = jax.random.PRNGKey(0)
    ks = jax.random.split(key, 12)

    # 1x1 Conv1d weights == dense on the channel axis
    w1 = jax.random.normal(ks[0], (S, C), dtype=jnp.float32) * (1.0 / np.sqrt(C))
    b1 = jax.random.normal(ks[1], (S,), dtype=jnp.float32) * 0.1
    w2 = jax.random.normal(ks[2], (C, S), dtype=jnp.float32) * (1.0 / np.sqrt(S))
    b2 = jax.random.normal(ks[3], (C,), dtype=jnp.float32) * 0.1

    # --- case 1: small L -> fused single-block path (with and without lengths)
    L = 32
    x = jax.random.normal(ks[4], (B, C, L), dtype=jnp.float32)
    lengths = jax.random.uniform(ks[5], (B,), minval=0.5, maxval=1.0)

    out = jax.block_until_ready(se_block(x, w1, b1, w2, b2, lengths))
    np.testing.assert_allclose(np.asarray(out),
                               np.asarray(se_block_ref(x, w1, b1, w2, b2, lengths)),
                               rtol=1e-5, atol=1e-5)

    out_nl = jax.block_until_ready(se_block(x, w1, b1, w2, b2, None))
    np.testing.assert_allclose(np.asarray(out_nl),
                               np.asarray(se_block_ref(x, w1, b1, w2, b2, None)),
                               rtol=1e-5, atol=1e-5)

    # --- case 2: forced time tiling -> two-pass path with (B, C, 1) gates
    L2 = 256
    x2 = jax.random.normal(ks[6], (B, C, L2), dtype=jnp.float32)
    lengths2 = jax.random.uniform(ks[7], (B,), minval=0.5, maxval=1.0)
    out2 = jax.block_until_ready(se_block(x2, w1, b1, w2, b2, lengths2, time_tile=128))
    np.testing.assert_allclose(np.asarray(out2),
                               np.asarray(se_block_ref(x2, w1, b1, w2, b2, lengths2)),
                               rtol=1e-5, atol=1e-5)

    # --- case 3: non-128-divisible L with forced tiling -> padded two-pass path
    L3 = 200
    x3 = jax.random.normal(ks[8], (B, C, L3), dtype=jnp.float32)
    lengths3 = jax.random.uniform(ks[9], (B,), minval=0.5, maxval=1.0)
    out3 = jax.block_until_ready(se_block(x3, w1, b1, w2, b2, lengths3, time_tile=128))
    assert out3.shape == (B, C, L3)
    np.testing.assert_allclose(np.asarray(out3),
                               np.asarray(se_block_ref(x3, w1, b1, w2, b2, lengths3)),
                               rtol=1e-5, atol=1e-5)

    # --- case 4: longer L, auto plan -> fused path with in-kernel time chunking
    L4 = 2048
    x4 = jax.random.normal(ks[10], (B, C, L4), dtype=jnp.float32)
    lengths4 = jax.random.uniform(ks[11], (B,), minval=0.5, maxval=1.0)
    out4 = jax.block_until_ready(se_block(x4, w1, b1, w2, b2, lengths4))
    np.testing.assert_allclose(np.asarray(out4),
                               np.asarray(se_block_ref(x4, w1, b1, w2, b2, lengths4)),
                               rtol=1e-5, atol=1e-5)

    # --- case 5: bf16 input (bf16 excitation weights, looser tolerance)
    xb = x.astype(jnp.bfloat16)
    outb = jax.block_until_ready(se_block(xb, w1, b1, w2, b2, lengths))
    np.testing.assert_allclose(
        np.asarray(outb, dtype=np.float32),
        np.asarray(se_block_ref(xb, w1, b1, w2, b2, lengths), dtype=np.float32),
        rtol=2e-2, atol=2e-2)

    print("KERNEL_OK")
</pallas_src>

<mosaic_0001>
module attributes {stable_mosaic.version = 11 : i64} {
  func.func @_se_fused_kernel(%arg0: i32, %arg1: memref<1x1x1xi32, #tpu.memory_space<vmem>>, %arg2: memref<1x1x1xf32, #tpu.memory_space<vmem>>, %arg3: memref<1x16x32xf32, #tpu.memory_space<vmem>>, %arg4: memref<16x8xf32, #tpu.memory_space<vmem>>, %arg5: memref<1x8xf32, #tpu.memory_space<vmem>>, %arg6: memref<8x16xf32, #tpu.memory_space<vmem>>, %arg7: memref<1x16xf32, #tpu.memory_space<vmem>>, %arg8: memref<1x16x32xf32, #tpu.memory_space<vmem>>) attributes {dimension_semantics = [#tpu.dimension_semantics<parallel>], iteration_bounds = array<i64: 2>, scalar_prefetch = 0 : i64, scratch_operands = 0 : i64, tpu.core_type = #tpu.core_type<tc>, window_params = [{transform_indices = @transform_0, window_bounds = array<i64: 1, 1, 1>}, {transform_indices = @transform_1, window_bounds = array<i64: 1, 1, 1>}, {transform_indices = @transform_2, window_bounds = array<i64: 1, 16, 32>}, {pipeline_mode = #tpu.pipeline_mode<synchronous>, transform_indices = @transform_3, window_bounds = array<i64: 16, 8>}, {pipeline_mode = #tpu.pipeline_mode<synchronous>, transform_indices = @transform_4, window_bounds = array<i64: 1, 8>}, {pipeline_mode = #tpu.pipeline_mode<synchronous>, transform_indices = @transform_5, window_bounds = array<i64: 8, 16>}, {pipeline_mode = #tpu.pipeline_mode<synchronous>, transform_indices = @transform_6, window_bounds = array<i64: 1, 16>}, {transform_indices = @transform_7, window_bounds = array<i64: 1, 16, 32>}]} {
    %c0 = arith.constant 0 : index
    %c0_0 = arith.constant 0 : index
    %c0_1 = arith.constant 0 : index
    %0 = vector.load %arg1[%c0, %c0_0, %c0_1] : memref<1x1x1xi32, #tpu.memory_space<vmem>>, vector<1x1x1xi32>
    %c0_2 = arith.constant 0 : index
    %c0_3 = arith.constant 0 : index
    %c0_4 = arith.constant 0 : index
    %1 = vector.load %arg2[%c0_2, %c0_3, %c0_4] : memref<1x1x1xf32, #tpu.memory_space<vmem>>, vector<1x1x1xf32>
    %2 = vector.shape_cast %1 : vector<1x1x1xf32> to vector<1x1xf32>
    %c0_5 = arith.constant 0 : index
    %c0_6 = arith.constant 0 : index
    %c0_7 = arith.constant 0 : index
    %3 = vector.load %arg3[%c0_5, %c0_6, %c0_7] : memref<1x16x32xf32, #tpu.memory_space<vmem>>, vector<1x16x32xf32>
    %4 = tpu.iota {dimensions = array<i32: 2>} : vector<1x1x32xi32>
    %c0_i32 = arith.constant 0 : i32
    %5 = vector.broadcast %c0_i32 : i32 to vector<1x1x32xi32>
    %6 = arith.addi %4, %5 : vector<1x1x32xi32>
    %7 = vector.broadcast %0 : vector<1x1x1xi32> to vector<1x1x32xi32>
    %8 = arith.cmpi slt, %6, %7 : vector<1x1x32xi32>
    %cst = arith.constant 0.000000e+00 : f32
    %9 = vector.shape_cast %8 : vector<1x1x32xi1> to vector<1x1x32xi1>
    %10 = vector.broadcast %9 : vector<1x1x32xi1> to vector<1x16x32xi1>
    %11 = vector.broadcast %cst : f32 to vector<1x16x32xf32>
    %12 = arith.select %10, %3, %11 : vector<1x16x32xi1>, vector<1x16x32xf32>
    %cst_8 = arith.constant dense<0.000000e+00> : vector<1x16xf32>
    %13 = vector.multi_reduction <add>, %12, %cst_8 [2] : vector<1x16x32xf32> to vector<1x16xf32>
    %14 = vector.broadcast %2 : vector<1x1xf32> to vector<1x16xf32>
    %15 = arith.mulf %13, %14 : vector<1x16xf32>
    %c0_9 = arith.constant 0 : index
    %c0_10 = arith.constant 0 : index
    %16 = vector.load %arg4[%c0_9, %c0_10] : memref<16x8xf32, #tpu.memory_space<vmem>>, vector<16x8xf32>
    %cst_11 = arith.constant dense<0.000000e+00> : vector<1x8xf32>
    %17 = tpu.matmul %15, %16, %cst_11 {dimension_numbers = #tpu.dot_dimension_numbers<[1], [0], [0], [1], [0, 0, 1, 1], [], []>} : vector<1x16xf32>, vector<16x8xf32>, vector<1x8xf32> -> vector<1x8xf32>
    %c0_12 = arith.constant 0 : index
    %c0_13 = arith.constant 0 : index
    %18 = vector.load %arg5[%c0_12, %c0_13] : memref<1x8xf32, #tpu.memory_space<vmem>>, vector<1x8xf32>
    %19 = arith.addf %17, %18 : vector<1x8xf32>
    %cst_14 = arith.constant 0.000000e+00 : f32
    %20 = vector.broadcast %cst_14 : f32 to vector<1x8xf32>
    %21 = arith.maximumf %19, %20 : vector<1x8xf32>
    %c0_15 = arith.constant 0 : index
    %c0_16 = arith.constant 0 : index
    %22 = vector.load %arg6[%c0_15, %c0_16] : memref<8x16xf32, #tpu.memory_space<vmem>>, vector<8x16xf32>
    %cst_17 = arith.constant dense<0.000000e+00> : vector<1x16xf32>
    %23 = tpu.matmul %21, %22, %cst_17 {dimension_numbers = #tpu.dot_dimension_numbers<[1], [0], [0], [1], [0, 0, 1, 1], [], []>} : vector<1x8xf32>, vector<8x16xf32>, vector<1x16xf32> -> vector<1x16xf32>
    %c0_18 = arith.constant 0 : index
    %c0_19 = arith.constant 0 : index
    %24 = vector.load %arg7[%c0_18, %c0_19] : memref<1x16xf32, #tpu.memory_space<vmem>>, vector<1x16xf32>
    %25 = arith.addf %23, %24 : vector<1x16xf32>
    %26 = arith.negf %25 : vector<1x16xf32>
    %27 = math.exp %26 : vector<1x16xf32>
    %cst_20 = arith.constant 1.000000e+00 : f32
    %28 = vector.broadcast %cst_20 : f32 to vector<1x16xf32>
    %29 = arith.addf %28, %27 : vector<1x16xf32>
    %30 = arith.divf %28, %29 : vector<1x16xf32>
    %31 = vector.shape_cast %30 : vector<1x16xf32> to vector<1x16x1xf32>
    %32 = vector.broadcast %31 : vector<1x16x1xf32> to vector<1x16x32xf32>
    %33 = arith.mulf %32, %3 : vector<1x16x32xf32>
    %c0_21 = arith.constant 0 : index
    %c0_22 = arith.constant 0 : index
    %c0_23 = arith.constant 0 : index
    %34 = vector.load %arg8[%c0_21, %c0_22, %c0_23] : memref<1x16x32xf32, #tpu.memory_space<vmem>>, vector<1x16x32xf32>
    tpu.vector_store %arg8[%c0_21, %c0_22, %c0_23], %33 {strides = array<i32>} : memref<1x16x32xf32, #tpu.memory_space<vmem>>, vector<1x16x32xf32>,
    return
  }
  func.func @transform_0(%arg0: i32) -> (i32, i32, i32) {
    %c0_i32 = arith.constant 0 : i32
    %c0_i32_0 = arith.constant 0 : i32
    %c0_i32_1 = arith.constant 0 : i32
    return %arg0, %c0_i32, %c0_i32_0 : i32, i32, i32
  }
  func.func @transform_1(%arg0: i32) -> (i32, i32, i32) {
    %c0_i32 = arith.constant 0 : i32
    %c0_i32_0 = arith.constant 0 : i32
    %c0_i32_1 = arith.constant 0 : i32
    return %arg0, %c0_i32, %c0_i32_0 : i32, i32, i32
  }
  func.func @transform_2(%arg0: i32) -> (i32, i32, i32) {
    %c0_i32 = arith.constant 0 : i32
    %c0_i32_0 = arith.constant 0 : i32
    %c0_i32_1 = arith.constant 0 : i32
    return %arg0, %c0_i32, %c0_i32_0 : i32, i32, i32
  }
  func.func @transform_3(%arg0: i32) -> (i32, i32) {
    %c0_i32 = arith.constant 0 : i32
    %c0_i32_0 = arith.constant 0 : i32
    %c0_i32_1 = arith.constant 0 : i32
    return %c0_i32, %c0_i32_0 : i32, i32
  }
  func.func @transform_4(%arg0: i32) -> (i32, i32) {
    %c0_i32 = arith.constant 0 : i32
    %c0_i32_0 = arith.constant 0 : i32
    %c0_i32_1 = arith.constant 0 : i32
    return %c0_i32, %c0_i32_0 : i32, i32
  }
  func.func @transform_5(%arg0: i32) -> (i32, i32) {
    %c0_i32 = arith.constant 0 : i32
    %c0_i32_0 = arith.constant 0 : i32
    %c0_i32_1 = arith.constant 0 : i32
    return %c0_i32, %c0_i32_0 : i32, i32
  }
  func.func @transform_6(%arg0: i32) -> (i32, i32) {
    %c0_i32 = arith.constant 0 : i32
    %c0_i32_0 = arith.constant 0 : i32
    %c0_i32_1 = arith.constant 0 : i32
    return %c0_i32, %c0_i32_0 : i32, i32
  }
  func.func @transform_7(%arg0: i32) -> (i32, i32, i32) {
    %c0_i32 = arith.constant 0 : i32
    %c0_i32_0 = arith.constant 0 : i32
    %c0_i32_1 = arith.constant 0 : i32
    return %arg0, %c0_i32, %c0_i32_0 : i32, i32, i32
  }
}

</mosaic_0001>

<bundles_post_ra>
// kernel: tpu_custom_call.1
= control target key start
LH: loop header
LB: loop body
LE: loop exit
PB: predicated region body
PF: predicated region fallthrough
CT: control target
= control target key end

     0   :  { %12 = vsyncpa [#allocation3], 0  ;;  %s947_s0 = inlined_call_operand.vmem [shape: s32[2,1,1], index: 0, kind: input, shape index: {}]   ;;  %s948_s1 = inlined_call_operand.vmem [shape: f32[2,1,1], index: 1, kind: input, shape index: {}]   ;;  %s949_s2 = inlined_call_operand.hbm [shape: f32[2,16,32], index: 2, kind: input, shape index: {}]   ;;  %s950_s3 = inlined_call_operand.vmem [shape: f32[16,8], index: 3, kind: input, shape index: {}]   ;;  %s951_s4 = inlined_call_operand.vmem [shape: f32[1,8], index: 4, kind: input, shape index: {}]   ;;  %s952_s5 = inlined_call_operand.vmem [shape: f32[8,16], index: 5, kind: input, shape index: {}]   ;;  %s953_s6 = inlined_call_operand.vmem [shape: f32[1,16], index: 6, kind: input, shape index: {}]   ;;  %s954_s7 = inlined_call_operand.hbm [shape: f32[2,16,32], index: 7, kind: output, shape index: {}]  }
   0x1   :  { %14 = vsyncpa [#allocation3 + $0x1], 0 }
   0x2   :  { %15 = vsyncpa [#allocation4], 0 }
   0x3   :  { %17 = vsyncpa [#allocation4 + $0x1], 0  ;;  %s781_s24 = smov 0   ;;  %s783_s25 = smov 0  }
   0x4   :  { %s785_s26 = smov 0   ;;  %s787_s27 = smov 0  }
   0x5 LB: > { %s802_s28 = sadd.s32 4294967295, %s734_s27   ;;  %s560_s29 = sadd.s32 4294967294, %s734_s27   ;;  %s734_s27 = sphi %s787_s27, %s966_s27   ;;  %s730_s26 = sphi %s785_s26, %s965_s26   ;;  %s726_s25 = sphi %s783_s25, %s964_s25   ;;  %s722_s24 = sphi %s781_s24, %s963_s24  }
   0x6   : > { %s806_s30 = sadd.s32 1, %s734_s27   ;;  %s82_s8 = sadd.s32 1, %s730_s26 }
   0x7   : > { %s79_s9 = ssub.s32 %s734_s27, %s806_s30  ;;  %p89_p0 = scmp.ne.s32.totalorder %s730_s26, %s726_s25 }
   0x8   : > { %p80_p1 = scmp.eq.s32.totalorder %s79_s9, 0  ;;  %p90_p2 = scmp.eq.s32.totalorder %s734_s27, 0 }
   0x9   : > { %p95_p3 = scmp.ne.s32.totalorder %s726_s25, %s722_s24  ;;  %p96_p4 = scmp.eq.s32.totalorder %s802_s28, 0 }
   0xa   : > { %s818_s10 = scalar_select %p80_p1, %s730_s26, %s82_s8  }
   0xb   : > { %p820_p5 = por %p90_p2, %p89_p0  ;;  %p824_p6 = por %p96_p4, %p95_p3 }
   0xc   : > { %955 = sst [smem:[#allocation8_spill]] %s818_s10  ;;  %p203_p7 = scmp.eq.s32.totalorder %s802_s28, 1 }
   0xd   : > { %p209_p8 = scmp.eq.s32.totalorder %s560_s29, 1  ;;  %p591_p10 = scmp.lt.s32.totalorder %s734_s27, 2 }
   0xe   : > { %p831_p11 = por %p203_p7, %p89_p0  ;;  %s253_s15 = sand.u32 1, %s730_s26  }
   0xf   : > { %p835_p12 = por %p209_p8, %p95_p3  ;;  %s577_s16 = sshll.u32 %s734_s27, 4 }
  0x10   : > { %s563_s17 = sshll.u32 %s253_s15, 4  ;;  %s262_s20 = scalar_lea.hbm %s949_s2, %s577_s16 }
  0x11   : > { %s263_s21 = sshll.u32 %s262_s20, 4  ;;  %s257_s22 = scalar_lea.vmem [#allocation2], %s563_s17  ;;  %s264_s21 = int_to_ptr.hbm [resolvable:$true] %s263_s21 }
  0x12   : > { %s265_s23 = sshll.u32 %s257_s22, 4  ;;  %p846_p13 = pnand %p591_p10, %p820_p5  ;;  %s266_s23 = int_to_ptr.vmem [resolvable:$true] %s265_s23 }
  0x13   : > { %p566_p0 = scmp.ge.s32.totalorder %s734_s27, 1  ;;  %p273_p1 = scmp.lt.s32.totalorder %s734_s27, 3 }
  0x14   : > { %s254_s8 = scalar_lea.sflag [#allocation3], %s253_s15  ;;  %s638_s9 = sshra.s32 %s264_s21, 4  ;;  %s639_s9 = int_to_ptr.hbm [resolvable:$true] %s638_s9 }
  0x15   : > { %s640_s10 = scalar_lea.hbm %s639_s9, 16  ;;  %p642_p3 = pneg %p846_p13 }
  0x16   : > { %p641_p2 = scmp.ne.s32.totalorder %s639_s9, %s640_s10  ;;  %s645_s11 = scalar_lea.hbm %s949_s2, 32 }
  0x17   : > { %p646_p5 = scmp.lt.s32.totalorder %s639_s9, %s949_s2  ;;  %p647_p8 = scmp.lt.s32.totalorder %s645_s11, %s640_s10 }
  0x18   : > { %p643_p4 = pnand %p642_p3, %p641_p2 }
  0x19   : > { %p648_p10 = por %p647_p8, %p646_p5 }
  0x1a   : > { %p644_p7 = pneg %p643_p4 }
  0x1c   : > { %p649_p9 = pnand %p648_p10, %p644_p7 }
  0x1e   : > { %652 = shalt.err (!%p649_p9)
}
  0x1f   : > { %s736_s15 = smov 128   ;;  %s737_s20 = smov 8  }
  0x20   : > { %586 = dma.hbm_to_vmem [thread:$0]  (!%p846_p13), %s264_s21, 256, %s266_s23, %s254_s8, %s736_s15, %s736_s15, %s737_s20  }
  0x21   : > { %p274_p2 = pnand %p566_p0, %p273_p1 }
  0x22   : > { %s867_s22 = sand.u32 (!%p274_p2), 1, %s726_s25  }
  0x23   : > { %277 = sbr.rel (%p274_p2) target bundleno = 697 (0x2b9), region = 48  ;;  %s567_s10 = sshll.u32 (!%p274_p2), %s867_s22, 4 }
  0x24   : > { %s280_s9 = scalar_lea.sflag (!%p274_p2), [#allocation3], %s867_s22  ;;  %s283_s16 = scalar_lea.vmem (!%p274_p2), [#allocation2], %s567_s10 }
  0x28   : > { %713 = dma.done.wait (%p824_p6), %s280_s9, 256  }
  0x29   : > { %715 = vsyncadd (%p824_p6), %s280_s9, 4294967040  ;;  %p321_p9 = scmp.lt.s32.totalorder %s802_s28, 1  ;;  %v738_v0 = vmov 0   ;;  %v331_v3 = vlaneseq  ;;  %v885_v7 = vld [vmem:[%s283_s16] sm:$0xff]  ;;  %vm342_vm0 = vcmask 261120   ;;  %v889_v10 = vld [vmem:[%s283_s16 + $0x8] sm:$0xff] }
  0x2a   : > { %630 = vset.pattern.permute.xlu0 %v738_v0  ;;  %v358_v13 = vld [vmem:[%s950_s3 + $0x8] sm:$0xff]  ;;  %v357_v14 = vld [vmem:[%s950_s3] sm:$0xff]  ;;  %vm365_vm2 = vcmask 130112   ;;  %vm367_vm3 = vcmask 130048   ;;  %vm393_vm4 = vcmask 64512   ;;  %s320_s17 = scalar_lea.vmem [#allocation5], %s567_s10 }
  0x2b   : > { %s322_s21 = scalar_select %p321_p9, %s802_s28, 1  ;;  %v332_v4 = vand.u32 127, %v331_v3  ;;  %384 = vmatpush.msra.mxu0 %v358_v13  ;;  %v391_v25 = vld [vmem:[%s952_s5] sm:$0xff]  ;;  %v438_v30 = vshrl.u32 %v331_v3, 7 }
  0x2c   : > { %412 = vmatpush.msra.mxu1 %v391_v25  ;;  %v359_v26 = vld [vmem:[%s951_s4] sm:$0x1]  ;;  %s578_s11 = sshll.u32 %s802_s28, 4  ;;  %s466_s15 = sshll.u32 %s320_s17, 4  ;;  %s467_s15 = int_to_ptr.vmem [resolvable:$true] %s466_s15 }
  0x2d   : > { %s323_s8 = scalar_lea.vmem %s947_s0, %s322_s21  ;;  %s326_s18 = scalar_lea.vmem %s948_s1, %s322_s21  ;;  %385 = vmatpush.msra.mxu0 %v357_v14  ;;  %v363_v19 = vadd.s32 4294967288, %v332_v4  ;;  %631 = vset.pattern.permute.xlu2 %v438_v30  ;;  %v445_v31 = vadd.s32 8, %v438_v30  ;;  %v392_v32 = vld [vmem:[%s953_s6] sm:$0x1] }
  0x2e   : > { %v327_v1 = vld [vmem:[%s323_s8] sm:$0x1]  ;;  %s465_s19 = scalar_lea.hbm %s954_s7, %s578_s11  ;;  %s454_s9 = scalar_lea.sflag [#allocation4], %s867_s22 }
  0x2f   : > { %334 = vperm.xlu0 %630, %v327_v1   ;;  %v328_v2 = vld [vmem:[%s326_s18] sm:$0x1]  ;;  %s468_s20 = sshll.u32 %s465_s19, 4  ;;  %s688_s23 = scalar_lea.hbm %s954_s7, 32  ;;  %s469_s20 = int_to_ptr.hbm [resolvable:$true] %s468_s20 }
  0x30   : > { %s682_s16 = sshra.s32 %s469_s20, 4  ;;  %s683_s16 = int_to_ptr.hbm [resolvable:$true] %s682_s16 }
  0x31   : > { %s684_s10 = scalar_lea.hbm %s683_s16, 16  ;;  %p689_p1 = scmp.lt.s32.totalorder %s683_s16, %s954_s7 }
  0x32   : > { %p685_p6 = scmp.ne.s32.totalorder %s683_s16, %s684_s10  ;;  %p690_p3 = scmp.lt.s32.totalorder %s688_s23, %s684_s10 }
  0x34   : > { %p686_p13 = pnand %p685_p6, %p831_p11  ;;  %p691_p4 = por %p690_p3, %p689_p1 }
  0x36   : > { %p687_p0 = pneg %p686_p13 }
  0x37   : > { %351 = vperm.xlu0 %630, %v328_v2  }
  0x38   : > { %p692_p7 = pnand %p691_p4, %p687_p0 }
  0x3f   : > { %633 = vset.pattern.permute.xlu0 %v445_v31 }
  0xa1   : > { %v335_v5 = vpop.permute.xlu0 %334 }
  0xa2   : > { %v336_v6 = vperm.slane %v335_v5, 0 }
  0xa4   : > { %vm337_vm1 = vcmp.lt.s32.totalorder %v332_v4, %v336_v6 }
  0xa5   : > { %v340_v8 = vsel %vm337_vm1, %v885_v7, 0.0  ;;  %v341_v11 = vsel %vm337_vm1, %v889_v10, 0.0 }
  0xa6   : > { %v343_v9 = vsel %vm342_vm0, %v340_v8, 0.0  ;;  %v346_v12 = vsel %vm342_vm0, %v341_v11, 0.0 }
  0xa7   : > { %344 = vadd.xlane.f32.xlu1 %v343_v9 }
  0xa9   : > { %v352_v16 = vpop.permute.xlu0 %351 }
  0xaa   : > { %v354_v17 = vperm.slane %v352_v16, 0 }
  0xaf   : > { %347 = vadd.xlane.f32.xlu1 %v346_v12 }
 0x11a   : > { %v345_v15 = vpop.xlane.xlu1 %344 }
 0x11b   : > { %v355_v18 = vmul.f32 %v354_v17, %v345_v15 }
 0x11d   : > { %v362_v22 = vperm.slane %v355_v18, %v332_v4 }
 0x122   : > { %v348_v20 = vpop.xlane.xlu1 %347 }
 0x123   : > { %v356_v21 = vmul.f32 %v354_v17, %v348_v20 }
 0x125   : > { %v364_v23 = vperm.slane %v356_v21, %v363_v19 }
 0x127   : > { %v366_v24 = vsel %vm365_vm2, %v364_v23, %v362_v22 }
 0x128   : > { %569 = vmatmul.msk.f32.vlgmr.msra.gmra.mxu0 %vm367_vm3, %v366_v24 }
 0x1a5   : > { %v387_v27 = vpop.f32.mrf.mxu0 }
 0x1a6   : > { %v388_v28 = vadd.f32 %v387_v27, %v359_v26 }
 0x1a8   : > { %v390_v29 = vmax.f32 %v388_v28, 0.0 }
 0x1aa   : > { %570 = vmatmul.msk.f32.vlgmr.msra.gmra.mxu1 %vm393_vm4, %v390_v29 }
 0x227   : > { %v414_v33 = vpop.f32.mrf.mxu1 }
 0x228   : > { %v415_v34 = vadd.f32 %v414_v33, %v392_v32 }
 0x22a   : > { %v571_v35 = vmul.f32 -1.442695, %v415_v34 }
 0x22c   : > { %634 = vpow2.f32 %v571_v35 }
 0x232   : > { %v635_v36 = vpop.eup %634 }
 0x233   : > { %v420_v37 = vadd.f32 1.0, %v635_v36 }
 0x235   : > { %636 = vrcp.f32 %v420_v37  ;;  %v432_v41 = vand.u32 2147483648, %v420_v37  ;;  %v430_v43 = vand.u32 2147483647, %v420_v37  ;;  %vm426_vm6 = vweird.f32 %v420_v37 }
 0x237   : > { %v433_v45 = vor.u32 1.1754944e-38, %v432_v41  ;;  %vm431_vm8 = vcmp.eq.f32.partialorder %v430_v43, 8.507059e+37 }
 0x23b   : > { %v637_v38 = vpop.eup %636 }
 0x23c   : > { %v422_v39 = vmul.f32 %v637_v38, %v420_v37  ;;  %vm427_vm5 = vweird.f32 %v637_v38 }
 0x23d   : > { %vm428_vm7 = vmor %vm426_vm6, %vm427_vm5 }
 0x23e   : > { %v423_v40 = vsub.f32 1.0, %v422_v39 }
 0x240   : > { %v424_v42 = vmul.f32 %v637_v38, %v423_v40 }
 0x242   : > { %v425_v44 = vadd.f32 %v637_v38, %v424_v42 }
 0x244   : > { %v429_v46 = vsel %vm428_vm7, %v637_v38, %v425_v44 }
 0x245   : > { %v434_v47 = vsel %vm431_vm8, %v433_v45, %v429_v46 }
 0x246   : > { %v436_v48 = vperm.slane %v434_v47, 0 }
 0x248   : > { %441 = vperm.xlu2 %631, %v436_v48  }
 0x250   : > { %632 = vset.pattern.permute.xlu2 %v445_v31 }
 0x258   : > { %447 = vperm.xlu2 %632, %v436_v48  }
 0x2a2   : > { %v442_v49 = vpop.permute.xlu2 %441 }
 0x2a3   : > { %v449_v50 = vmul.f32 %v442_v49, %v885_v7 }
 0x2a5   : > { %451 = vst.msk [vmem:[%s320_s17] sm:$0xff] %vm342_vm0, %v449_v50 }
 0x2b2   : > { %v448_v51 = vpop.permute.xlu2 %447 }
 0x2b3   : > { %v450_v52 = vmul.f32 %v448_v51, %v889_v10 }
 0x2b5   : > { %452 = vst.msk [vmem:[%s320_s17 + $0x8] sm:$0xff] %vm342_vm0, %v450_v52 }
 0x2b6   : > { %695 = shalt.err (!%p692_p7)
}
 0x2b7   : > { %s739_s22 = smov 128   ;;  %s740_s17 = smov 8  }
 0x2b8   : > { %581 = dma.vmem_to_hbm [thread:$0]  (%p831_p11), %s467_s15, 256, %s469_s20, %s454_s9, %s739_s22, %s739_s22, %s740_s17  }
 0x2b9 PF: > { %s483_s11 = sand.u32 1, %s722_s24   ;;  %p961_p5 = scmp.ge.s32.totalorder %s734_s27, 2 }
 0x2ba   : > { %s484_s18 = scalar_lea.sflag [#allocation4], %s483_s11 }
 0x2bb   : > { %p588_p8 = pnand %p961_p5, %p835_p12 }
 0x2bd   : > { %p589_p10 = pneg %p588_p8 }
 0x2bf   : > { %717 = dma.done.wait (%p589_p10), %s484_s18, 256  }
 0x2c0   : > { %719 = vsyncadd (%p589_p10), %s484_s18, 4294967040  ;;  %s962_s12 = sld [smem:[#allocation8_spill]]  ;;  %p20_p2 = scmp.ge.s32.totalorder %s806_s30, 4  }
 0x2c1   : > { %s963_s24 = smov %s726_s25  ;;  %s964_s25 = smov %s730_s26 }
 0x2c2   : > { %s966_s27 = smov %s806_s30  ;;  %22 = sbr.rel (!%p20_p2) target bundleno = 5 (0x5), region = 99 }
 0x2c6   : > { %s965_s26 = smov %s962_s12 }
 0x2c7   :  { %490 = vsyncpa [#allocation3], 1 }
 0x2c8   :  { %492 = vsyncpa [#allocation3 + $0x1], 1 }
 0x2c9   :  { %493 = vsyncpa [#allocation4], 1 }
 0x2ca   :  { %495 = vsyncpa [#allocation4 + $0x1], 1 }

</bundles_post_ra>
